<compile_context>
chip_gen: v7x
topology: tpu7x:2x2x1
jax: 0.10.0
libtpu: 0.0.40
codegen_flags: <defaults>
</compile_context>

<pallas_src>
import jax
import jax.numpy as jnp
import numpy as np
from jax.experimental import pallas as pl
from jax.experimental.pallas import tpu as pltpu

_LANE = 128
_ROW = 16            # bf16-native sublane granularity for batch tiles


def _round_up(x, m):
    return (x + m - 1) // m * m


# ----------------------------------------------------------------------------
# Kernels
# ----------------------------------------------------------------------------
def _layer(w_refs, biases, bias_cols, h, k, relu):
    """One Linear(+ReLU): bf16 x bf16 MXU matmul, f32 accumulation, f32 bias."""
    acc = jnp.dot(h, w_refs[k][...], preferred_element_type=jnp.float32)
    acc = acc + biases[k:k + 1, :bias_cols[k]]
    if relu:
        acc = jnp.maximum(acc, 0.0)
    return acc


def _make_encoder_kernel(n_hidden, bias_cols):
    """get_latent: n_hidden x (Linear+ReLU), then ONE fused head matmul whose 128-lane
    output packs [mean | logvar] at lane offsets 0 and `latent`."""
    n_w = n_hidden + 1

    def kernel(x_ref, *refs):
        w_refs = refs[:n_w]
        biases = refs[n_w][...]                       # (n_layers, max_w) f32
        head_ref = refs[n_w + 1]
        h = x_ref[...]                                # bf16 (tile, in_dim)
        for i in range(n_hidden):
            h = _layer(w_refs, biases, bias_cols, h, i, True).astype(jnp.bfloat16)
        head = _layer(w_refs, biases, bias_cols, h, n_hidden, False)
        head_ref[...] = head.astype(head_ref.dtype)

    return kernel


def _make_decoder_kernel(n_hidden, n_dec, bias_cols):
    """get_recon: decoders in application (reversed) order; ReLU on all but the final
    ('First') decoder.  Bias rows live at offset n_hidden+1 in the shared bias stack."""

    def kernel(z_ref, *refs):
        w_refs = refs[:n_dec]
        biases = refs[n_dec][...]
        recon_ref = refs[n_dec + 1]
        d = z_ref[...]                                # bf16 (tile, head_width)
        for j in range(n_dec):
            k = n_hidden + 1 + j
            acc = jnp.dot(d, w_refs[j][...], preferred_element_type=jnp.float32)
            acc = acc + biases[k:k + 1, :bias_cols[k]]
            if j < n_dec - 1:
                d = jnp.maximum(acc, 0.0).astype(jnp.bfloat16)
            else:
                recon_ref[...] = acc.astype(recon_ref.dtype)

    return kernel


def _make_forward_kernel(n_hidden, n_dec, bias_cols):
    """Fused get_latent + get_recon(mean): the latent never leaves VMEM.  The first
    decoder weight has zero rows outside [0, latent), so feeding it the full packed
    [mean | logvar] head is exact (logvar lanes hit zero weight rows)."""
    n_w = n_hidden + 1 + n_dec

    def kernel(x_ref, *refs):
        w_refs = refs[:n_w]
        biases = refs[n_w][...]
        head_ref, recon_ref = refs[n_w + 1], refs[n_w + 2]

        h = x_ref[...]                                # bf16 (tile, in_dim)
        for i in range(n_hidden):
            h = _layer(w_refs, biases, bias_cols, h, i, True).astype(jnp.bfloat16)
        head = _layer(w_refs, biases, bias_cols, h, n_hidden, False)   # f32 (tile, head_w)
        head_ref[...] = head.astype(head_ref.dtype)

        d = head.astype(jnp.bfloat16)
        for j in range(n_dec):
            k = n_hidden + 1 + j
            acc = jnp.dot(d, w_refs[k][...], preferred_element_type=jnp.float32)
            acc = acc + biases[k:k + 1, :bias_cols[k]]
            if j < n_dec - 1:
                d = jnp.maximum(acc, 0.0).astype(jnp.bfloat16)
            else:
                recon_ref[...] = acc.astype(recon_ref.dtype)

    return kernel


# ----------------------------------------------------------------------------
# pallas_call wrapper
# ----------------------------------------------------------------------------
def _tiling(batch, batch_tile=None):
    """Single grid step for small batches; exactly 2 'parallel' steps for mid batches
    (v7x megacore shards, costs one ~0.35us step on v5e/v6e); 1024-row tiles beyond."""
    b_r = _round_up(max(batch, _ROW), _ROW)
    if batch_tile is not None:
        tile = _round_up(int(batch_tile), _ROW)
        return tile, _round_up(b_r, tile)
    if b_r <= 128:
        return b_r, b_r
    if b_r <= 2048:
        tile = _round_up(-(-b_r // 2), _ROW)
        return tile, _round_up(b_r, tile)
    tile = 1024
    return tile, _round_up(b_r, tile)


def _pad_rows(x, rows, cols=None):
    """bf16-cast and zero-pad batch rows (and, for the decoder input, lanes).  No full
    padded HBM copy of the encoder-input feature dim."""
    x = x.astype(jnp.bfloat16)
    pad_r = rows - x.shape[0]
    pad_c = 0 if cols is None else cols - x.shape[1]
    if pad_r or pad_c:
        x = jnp.pad(x, ((0, pad_r), (0, pad_c)))
    return x


def _pallas_mlp(kernel, x_pad, weights, bias_stack, out_widths, tile):
    b_pad, in_w = x_pad.shape
    grid = (b_pad // tile,)
    params = list(weights) + [bias_stack]

    param_bytes = sum(int(np.prod(p.shape)) * p.dtype.itemsize for p in params)
    row_io = in_w * x_pad.dtype.itemsize + sum(2 * w for w in out_widths)   # bf16 outputs
    flops = 2 * b_pad * sum(int(np.prod(w.shape)) for w in weights)

    # VMEM budget: double-buffered params + double-buffered I/O tiles + compiler scratch,
    # hard-capped at 48 MiB (leave headroom under v7x's 64 MiB physical VMEM).
    vmem_need = 2 * param_bytes + 4 * tile * row_io + (8 << 20)
    vmem_limit = int(min(48 << 20, max(16 << 20, vmem_need)))

    in_specs = [pl.BlockSpec((tile, in_w), lambda i: (i, 0))]
    in_specs += [pl.BlockSpec(p.shape, lambda i: (0, 0)) for p in params]
    out_specs = tuple(pl.BlockSpec((tile, w), lambda i: (i, 0)) for w in out_widths)
    out_shape = tuple(jax.ShapeDtypeStruct((b_pad, w), jnp.bfloat16) for w in out_widths)

    outs = pl.pallas_call(
        kernel,
        out_shape=out_shape,
        grid_spec=pl.GridSpec(grid=grid, in_specs=in_specs, out_specs=out_specs),
        compiler_params=pltpu.CompilerParams(
            dimension_semantics=("parallel",),
            vmem_limit_bytes=vmem_limit,
        ),
        cost_estimate=pl.CostEstimate(
            flops=flops, transcendentals=0,
            bytes_accessed=param_bytes + b_pad * row_io),
    )(x_pad, *params)
    return tuple(outs) if isinstance(outs, (list, tuple)) else (outs,)


# ----------------------------------------------------------------------------
# Public wrappers (PyTorch-equivalent API)
# ----------------------------------------------------------------------------
def vae_get_latent(x, packed, batch_tile=None):
    b = x.shape[0]
    tile, b_pad = _tiling(b, batch_tile)
    x_pad = _pad_rows(x, b_pad)                       # feature dim stays unpadded
    weights = list(packed["enc_w"]) + [packed["head_mat"]]
    kernel = _make_encoder_kernel(packed["n_hidden"], packed["bias_cols"])
    (head,) = _pallas_mlp(kernel, x_pad, weights, packed["bias_stack"],
                          (packed["head_width"],), tile)
    lat = packed["latent"]
    return (head[:b, :lat].astype(jnp.float32),
            head[:b, lat:2 * lat].astype(jnp.float32))


def vae_get_recon(z, packed, batch_tile=None):
    b = z.shape[0]
    tile, b_pad = _tiling(b, batch_tile)
    z_pad = _pad_rows(z, b_pad, packed["head_width"])
    kernel = _make_decoder_kernel(packed["n_hidden"], packed["n_dec"], packed["bias_cols"])
    (recon,) = _pallas_mlp(kernel, z_pad, packed["dec_w"], packed["bias_stack"],
                           (packed["in_p"],), tile)
    return recon[:b, :packed["in_dim"]].astype(jnp.float32)


def vae_forward(x, packed, batch_tile=None):
    """get_latent(x) -> (mean, logvar) and get_recon(mean) -> recon in ONE pallas_call."""
    b, in_dim = x.shape
    tile, b_pad = _tiling(b, batch_tile)
    x_pad = _pad_rows(x, b_pad)
    weights = list(packed["enc_w"]) + [packed["head_mat"]] + list(packed["dec_w"])
    kernel = _make_forward_kernel(packed["n_hidden"], packed["n_dec"], packed["bias_cols"])
    head, recon = _pallas_mlp(kernel, x_pad, weights, packed["bias_stack"],
                              (packed["head_width"], packed["in_p"]), tile)
    lat = packed["latent"]
    return (head[:b, :lat].astype(jnp.float32),
            head[:b, lat:2 * lat].astype(jnp.float32),
            recon[:b, :in_dim].astype(jnp.float32))


# ----------------------------------------------------------------------------
# Parameter construction / packing
# ----------------------------------------------------------------------------
def init_vae_params(key, layer_sizes):
    """model_set[idx]: encoder Linear(l[idx]->l[idx+1]), decoder Linear(l[idx+1]->l[idx]).
    var_layer: encoder Linear(l[-2]->l[-1]).  Weights stored [in, out] (pre-transposed)."""
    enc, dec = [], []
    for idx in range(len(layer_sizes) - 1):
        n_vis, n_hid = layer_sizes[idx], layer_sizes[idx + 1]
        key, k1, k2, k3 = jax.random.split(key, 4)
        enc_w = jax.random.normal(k1, (n_vis, n_hid), jnp.float32) / np.sqrt(n_vis)
        enc_b = jax.random.normal(k2, (1, n_hid), jnp.float32) * 0.01
        dec_w = jax.random.normal(k3, (n_hid, n_vis), jnp.float32) / np.sqrt(n_hid)
        dec_b = jnp.zeros((1, n_vis), jnp.float32)     # decoder bias zero-init (AE_layer)
        enc.append((enc_w, enc_b))
        dec.append((dec_w, dec_b))
    key, k1, k2 = jax.random.split(key, 3)
    var_w = jax.random.normal(k1, (layer_sizes[-2], layer_sizes[-1]), jnp.float32) / np.sqrt(
        layer_sizes[-2])
    var_b = jax.random.normal(k2, (1, layer_sizes[-1]), jnp.float32) * 0.01
    return {"enc": enc, "dec": dec, "var": (var_w, var_b)}


def pack_vae_params(params, param_dtype=jnp.bfloat16):
    """Zero-pad feature dims to 128 multiples (first encoder weight keeps unpadded input
    rows), fuse the mean/logvar heads into one [hid, head_width] matmul whose columns pack
    [mean | logvar] at offsets 0 and `latent`, reorder the decoders into application
    (reversed) order, and stack all biases into ONE f32 array."""
    enc, dec = params["enc"], params["dec"]
    var_w, var_b = params["var"]
    n = len(enc)
    latent = enc[-1][0].shape[1]
    in_dim = enc[0][0].shape[0]
    in_p = _round_up(in_dim, _LANE)
    head_width = _round_up(2 * latent, _LANE)

    def pad_w(w, rows, cols):
        return (jnp.zeros((rows, cols), param_dtype)
                .at[:w.shape[0], :w.shape[1]].set(w.astype(param_dtype)))

    enc_w, bias_vecs, bias_cols = [], [], []
    for idx in range(n - 1):                           # ReLU encoder layers
        w, b = enc[idx]
        rows = w.shape[0] if idx == 0 else _round_up(w.shape[0], _LANE)
        cols = _round_up(w.shape[1], _LANE)
        enc_w.append(pad_w(w, rows, cols))
        bias_vecs.append(b.reshape(-1).astype(jnp.float32))
        bias_cols.append(cols)

    # Fused [mean | logvar] head at lane offsets 0 and `latent`.
    wm, bm = enc[-1]
    head_rows = wm.shape[0] if n == 1 else _round_up(wm.shape[0], _LANE)
    head_mat = jnp.zeros((head_rows, head_width), param_dtype)
    head_mat = head_mat.at[:wm.shape[0], :latent].set(wm.astype(param_dtype))
    head_mat = head_mat.at[:var_w.shape[0], latent:2 * latent].set(var_w.astype(param_dtype))
    head_bias = jnp.zeros((head_width,), jnp.float32)
    head_bias = head_bias.at[:latent].set(bm.reshape(-1).astype(jnp.float32))
    head_bias = head_bias.at[latent:2 * latent].set(var_b.reshape(-1).astype(jnp.float32))
    bias_vecs.append(head_bias)
    bias_cols.append(head_width)

    # Decoders in application (reversed) order; the first one consumes the packed head
    # directly, so its rows are padded to head_width with zeros outside [0, latent).
    dec_w = []
    for j, idx in enumerate(reversed(range(n))):
        w, b = dec[idx]
        rows = head_width if j == 0 else _round_up(w.shape[0], _LANE)
        cols = _round_up(w.shape[1], _LANE)
        dec_w.append(pad_w(w, rows, cols))
        bias_vecs.append(b.reshape(-1).astype(jnp.float32))
        bias_cols.append(cols)

    max_w = max(bias_cols)
    bias_stack = jnp.zeros((len(bias_vecs), max_w), jnp.float32)
    for k, bv in enumerate(bias_vecs):
        bias_stack = bias_stack.at[k, :bv.shape[0]].set(bv)

    return {"enc_w": enc_w, "head_mat": head_mat, "dec_w": dec_w,
            "bias_stack": bias_stack, "bias_cols": tuple(bias_cols),
            "n_hidden": n - 1, "n_dec": n,
            "latent": latent, "in_dim": in_dim, "in_p": in_p, "head_width": head_width}


# ----------------------------------------------------------------------------
# Plain-JAX references
# ----------------------------------------------------------------------------
def ref_get_latent(x, params):
    h = x
    for w, b in params["enc"][:-1]:
        h = jnp.maximum(h @ w + b, 0.0)
    w, b = params["enc"][-1]
    wv, bv = params["var"]
    return h @ w + b, h @ wv + bv


def ref_get_recon(z, params):
    h = z
    n = len(params["dec"])
    for idx in reversed(range(n)):
        w, b = params["dec"][idx]
        h = h @ w + b
        if idx != 0:
            h = jnp.maximum(h, 0.0)
    return h


def ref_forward_bf16(x, params):
    """Mirrors the kernel math exactly: bf16 operands, f32 accumulation, f32 biases,
    bf16 inter-layer activations, bf16 output stores."""
    bf = lambda v: v.astype(jnp.bfloat16)
    h = bf(x)
    n = len(params["enc"])
    for idx in range(n - 1):
        w, b = params["enc"][idx]
        h = bf(jnp.maximum(jnp.dot(h, bf(w), preferred_element_type=jnp.float32) + b, 0.0))
    w, b = params["enc"][-1]
    wv, bv = params["var"]
    mean = jnp.dot(h, bf(w), preferred_element_type=jnp.float32) + b
    logvar = jnp.dot(h, bf(wv), preferred_element_type=jnp.float32) + bv
    d = bf(mean)
    for idx in reversed(range(n)):
        w, b = params["dec"][idx]
        acc = jnp.dot(d, bf(w), preferred_element_type=jnp.float32) + b
        d = bf(jnp.maximum(acc, 0.0)) if idx != 0 else acc
    return (bf(mean).astype(jnp.float32), bf(logvar).astype(jnp.float32),
            bf(d).astype(jnp.float32))


# ----------------------------------------------------------------------------
if __name__ == "__main__":
    # TODO(synk): VAE.forward() is literally `pass` in the source; get_latent/get_recon
    # (the model's functional forward path) are what the fused kernel implements.  The
    # layer-wise SGD pre-training loop / DataLoader is host-side training, not a kernel op.
    layer_sizes = [64, 32, 16, 8]
    batch = 20                                   # non-multiple of 8/16 -> exercises row pad

    key = jax.random.PRNGKey(0)
    key, kx = jax.random.split(key)
    x = jax.random.normal(kx, (batch, layer_sizes[0]), jnp.float32)
    params = init_vae_params(key, layer_sizes)
    packed = pack_vae_params(params)

    # Fused forward: encode -> packed [mean|logvar] head, decode(mean) -> recon, one launch.
    mean, logvar, recon = vae_forward(x, packed)
    jax.block_until_ready((mean, logvar, recon))

    # API-parity entry points must agree with the fused kernel (same bf16 math; tolerance
    # covers last-ulp bf16 rounding variance across separate compiles).
    m2, lv2 = vae_get_latent(x, packed)
    r2 = vae_get_recon(m2, packed)
    np.testing.assert_allclose(np.asarray(m2), np.asarray(mean), rtol=1e-2, atol=1e-2)
    np.testing.assert_allclose(np.asarray(lv2), np.asarray(logvar), rtol=1e-2, atol=1e-2)
    np.testing.assert_allclose(np.asarray(r2), np.asarray(recon), rtol=1e-2, atol=1e-2)

    # Structural check: kernel vs a JAX reference doing the exact same bf16/f32 math.
    bm, blv, br = ref_forward_bf16(x, params)
    np.testing.assert_allclose(np.asarray(mean), np.asarray(bm), rtol=2e-2, atol=2e-2)
    np.testing.assert_allclose(np.asarray(logvar), np.asarray(blv), rtol=2e-2, atol=2e-2)
    np.testing.assert_allclose(np.asarray(recon), np.asarray(br), rtol=2e-2, atol=2e-2)

    # Semantic check vs the full-f32 PyTorch-equivalent reference (loose tolerance covers
    # bf16 weight/activation quantization over the 6-matmul-deep path).
    fm, flv = ref_get_latent(x, params)
    fr = ref_get_recon(fm, params)
    np.testing.assert_allclose(np.asarray(mean), np.asarray(fm), rtol=1e-1, atol=1e-1)
    np.testing.assert_allclose(np.asarray(logvar), np.asarray(flv), rtol=1e-1, atol=1e-1)
    np.testing.assert_allclose(np.asarray(recon), np.asarray(fr), rtol=1e-1, atol=1e-1)

    print("KERNEL_OK")
</pallas_src>

<mosaic_0001>
module attributes {stable_mosaic.version = 11 : i64} {
  func.func @kernel(%arg0: i32, %arg1: memref<32x64xbf16, #tpu.memory_space<vmem>>, %arg2: memref<64x128xbf16, #tpu.memory_space<vmem>>, %arg3: memref<128x128xbf16, #tpu.memory_space<vmem>>, %arg4: memref<128x128xbf16, #tpu.memory_space<vmem>>, %arg5: memref<128x128xbf16, #tpu.memory_space<vmem>>, %arg6: memref<128x128xbf16, #tpu.memory_space<vmem>>, %arg7: memref<128x128xbf16, #tpu.memory_space<vmem>>, %arg8: memref<6x128xf32, #tpu.memory_space<vmem>>, %arg9: memref<32x128xbf16, #tpu.memory_space<vmem>>, %arg10: memref<32x128xbf16, #tpu.memory_space<vmem>>) attributes {dimension_semantics = [#tpu.dimension_semantics<parallel>], iteration_bounds = array<i64: 1>, scalar_prefetch = 0 : i64, scratch_operands = 0 : i64, tpu.core_type = #tpu.core_type<tc>, window_params = [{transform_indices = @transform_0, window_bounds = array<i64: 32, 64>}, {pipeline_mode = #tpu.pipeline_mode<synchronous>, transform_indices = @transform_1, window_bounds = array<i64: 64, 128>}, {pipeline_mode = #tpu.pipeline_mode<synchronous>, transform_indices = @transform_2, window_bounds = array<i64: 128, 128>}, {pipeline_mode = #tpu.pipeline_mode<synchronous>, transform_indices = @transform_3, window_bounds = array<i64: 128, 128>}, {pipeline_mode = #tpu.pipeline_mode<synchronous>, transform_indices = @transform_4, window_bounds = array<i64: 128, 128>}, {pipeline_mode = #tpu.pipeline_mode<synchronous>, transform_indices = @transform_5, window_bounds = array<i64: 128, 128>}, {pipeline_mode = #tpu.pipeline_mode<synchronous>, transform_indices = @transform_6, window_bounds = array<i64: 128, 128>}, {pipeline_mode = #tpu.pipeline_mode<synchronous>, transform_indices = @transform_7, window_bounds = array<i64: 6, 128>}, {transform_indices = @transform_8, window_bounds = array<i64: 32, 128>}, {transform_indices = @transform_9, window_bounds = array<i64: 32, 128>}]} {
    %c0 = arith.constant 0 : index
    %c0_0 = arith.constant 0 : index
    %0 = vector.load %arg8[%c0, %c0_0] : memref<6x128xf32, #tpu.memory_space<vmem>>, vector<6x128xf32>
    %c0_1 = arith.constant 0 : index
    %c0_2 = arith.constant 0 : index
    %1 = vector.load %arg1[%c0_1, %c0_2] : memref<32x64xbf16, #tpu.memory_space<vmem>>, vector<32x64xbf16>
    %c0_3 = arith.constant 0 : index
    %c0_4 = arith.constant 0 : index
    %2 = vector.load %arg2[%c0_3, %c0_4] : memref<64x128xbf16, #tpu.memory_space<vmem>>, vector<64x128xbf16>
    %cst = arith.constant dense<0.000000e+00> : vector<32x128xf32>
    %3 = tpu.matmul %1, %2, %cst {dimension_numbers = #tpu.dot_dimension_numbers<[1], [0], [0], [1], [0, 0, 1, 1], [], []>} : vector<32x64xbf16>, vector<64x128xbf16>, vector<32x128xf32> -> vector<32x128xf32>
    %4 = vector.extract_strided_slice %0 {offsets = [0, 0], sizes = [1, 128], strides = [1, 1]} : vector<6x128xf32> to vector<1x128xf32>
    %5 = vector.broadcast %4 : vector<1x128xf32> to vector<32x128xf32>
    %6 = arith.addf %3, %5 : vector<32x128xf32>
    %cst_5 = arith.constant 0.000000e+00 : f32
    %7 = vector.broadcast %cst_5 : f32 to vector<32x128xf32>
    %8 = arith.maximumf %6, %7 : vector<32x128xf32>
    %9 = arith.truncf %8 : vector<32x128xf32> to vector<32x128xbf16>
    %c0_6 = arith.constant 0 : index
    %c0_7 = arith.constant 0 : index
    %10 = vector.load %arg3[%c0_6, %c0_7] : memref<128x128xbf16, #tpu.memory_space<vmem>>, vector<128x128xbf16>
    %cst_8 = arith.constant dense<0.000000e+00> : vector<32x128xf32>
    %11 = tpu.matmul %9, %10, %cst_8 {dimension_numbers = #tpu.dot_dimension_numbers<[1], [0], [0], [1], [0, 0, 1, 1], [], []>} : vector<32x128xbf16>, vector<128x128xbf16>, vector<32x128xf32> -> vector<32x128xf32>
    %12 = vector.extract_strided_slice %0 {offsets = [1, 0], sizes = [1, 128], strides = [1, 1]} : vector<6x128xf32> to vector<1x128xf32>
    %13 = vector.broadcast %12 : vector<1x128xf32> to vector<32x128xf32>
    %14 = arith.addf %11, %13 : vector<32x128xf32>
    %cst_9 = arith.constant 0.000000e+00 : f32
    %15 = vector.broadcast %cst_9 : f32 to vector<32x128xf32>
    %16 = arith.maximumf %14, %15 : vector<32x128xf32>
    %17 = arith.truncf %16 : vector<32x128xf32> to vector<32x128xbf16>
    %c0_10 = arith.constant 0 : index
    %c0_11 = arith.constant 0 : index
    %18 = vector.load %arg4[%c0_10, %c0_11] : memref<128x128xbf16, #tpu.memory_space<vmem>>, vector<128x128xbf16>
    %cst_12 = arith.constant dense<0.000000e+00> : vector<32x128xf32>
    %19 = tpu.matmul %17, %18, %cst_12 {dimension_numbers = #tpu.dot_dimension_numbers<[1], [0], [0], [1], [0, 0, 1, 1], [], []>} : vector<32x128xbf16>, vector<128x128xbf16>, vector<32x128xf32> -> vector<32x128xf32>
    %20 = vector.extract_strided_slice %0 {offsets = [2, 0], sizes = [1, 128], strides = [1, 1]} : vector<6x128xf32> to vector<1x128xf32>
    %21 = vector.broadcast %20 : vector<1x128xf32> to vector<32x128xf32>
    %22 = arith.addf %19, %21 : vector<32x128xf32>
    %23 = arith.truncf %22 : vector<32x128xf32> to vector<32x128xbf16>
    %c0_13 = arith.constant 0 : index
    %c0_14 = arith.constant 0 : index
    %24 = vector.load %arg9[%c0_13, %c0_14] : memref<32x128xbf16, #tpu.memory_space<vmem>>, vector<32x128xbf16>
    tpu.vector_store %arg9[%c0_13, %c0_14], %23 {strides = array<i32>} : memref<32x128xbf16, #tpu.memory_space<vmem>>, vector<32x128xbf16>,
    %25 = arith.truncf %22 : vector<32x128xf32> to vector<32x128xbf16>
    %c0_15 = arith.constant 0 : index
    %c0_16 = arith.constant 0 : index
    %26 = vector.load %arg5[%c0_15, %c0_16] : memref<128x128xbf16, #tpu.memory_space<vmem>>, vector<128x128xbf16>
    %cst_17 = arith.constant dense<0.000000e+00> : vector<32x128xf32>
    %27 = tpu.matmul %25, %26, %cst_17 {dimension_numbers = #tpu.dot_dimension_numbers<[1], [0], [0], [1], [0, 0, 1, 1], [], []>} : vector<32x128xbf16>, vector<128x128xbf16>, vector<32x128xf32> -> vector<32x128xf32>
    %28 = vector.extract_strided_slice %0 {offsets = [3, 0], sizes = [1, 128], strides = [1, 1]} : vector<6x128xf32> to vector<1x128xf32>
    %29 = vector.broadcast %28 : vector<1x128xf32> to vector<32x128xf32>
    %30 = arith.addf %27, %29 : vector<32x128xf32>
    %cst_18 = arith.constant 0.000000e+00 : f32
    %31 = vector.broadcast %cst_18 : f32 to vector<32x128xf32>
    %32 = arith.maximumf %30, %31 : vector<32x128xf32>
    %33 = arith.truncf %32 : vector<32x128xf32> to vector<32x128xbf16>
    %c0_19 = arith.constant 0 : index
    %c0_20 = arith.constant 0 : index
    %34 = vector.load %arg6[%c0_19, %c0_20] : memref<128x128xbf16, #tpu.memory_space<vmem>>, vector<128x128xbf16>
    %cst_21 = arith.constant dense<0.000000e+00> : vector<32x128xf32>
    %35 = tpu.matmul %33, %34, %cst_21 {dimension_numbers = #tpu.dot_dimension_numbers<[1], [0], [0], [1], [0, 0, 1, 1], [], []>} : vector<32x128xbf16>, vector<128x128xbf16>, vector<32x128xf32> -> vector<32x128xf32>
    %36 = vector.extract_strided_slice %0 {offsets = [4, 0], sizes = [1, 128], strides = [1, 1]} : vector<6x128xf32> to vector<1x128xf32>
    %37 = vector.broadcast %36 : vector<1x128xf32> to vector<32x128xf32>
    %38 = arith.addf %35, %37 : vector<32x128xf32>
    %cst_22 = arith.constant 0.000000e+00 : f32
    %39 = vector.broadcast %cst_22 : f32 to vector<32x128xf32>
    %40 = arith.maximumf %38, %39 : vector<32x128xf32>
    %41 = arith.truncf %40 : vector<32x128xf32> to vector<32x128xbf16>
    %c0_23 = arith.constant 0 : index
    %c0_24 = arith.constant 0 : index
    %42 = vector.load %arg7[%c0_23, %c0_24] : memref<128x128xbf16, #tpu.memory_space<vmem>>, vector<128x128xbf16>
    %cst_25 = arith.constant dense<0.000000e+00> : vector<32x128xf32>
    %43 = tpu.matmul %41, %42, %cst_25 {dimension_numbers = #tpu.dot_dimension_numbers<[1], [0], [0], [1], [0, 0, 1, 1], [], []>} : vector<32x128xbf16>, vector<128x128xbf16>, vector<32x128xf32> -> vector<32x128xf32>
    %44 = vector.extract_strided_slice %0 {offsets = [5, 0], sizes = [1, 128], strides = [1, 1]} : vector<6x128xf32> to vector<1x128xf32>
    %45 = vector.broadcast %44 : vector<1x128xf32> to vector<32x128xf32>
    %46 = arith.addf %43, %45 : vector<32x128xf32>
    %47 = arith.truncf %46 : vector<32x128xf32> to vector<32x128xbf16>
    %c0_26 = arith.constant 0 : index
    %c0_27 = arith.constant 0 : index
    %48 = vector.load %arg10[%c0_26, %c0_27] : memref<32x128xbf16, #tpu.memory_space<vmem>>, vector<32x128xbf16>
    tpu.vector_store %arg10[%c0_26, %c0_27], %47 {strides = array<i32>} : memref<32x128xbf16, #tpu.memory_space<vmem>>, vector<32x128xbf16>,
    return
  }
  func.func @transform_0(%arg0: i32) -> (i32, i32) {
    %c0_i32 = arith.constant 0 : i32
    %c0_i32_0 = arith.constant 0 : i32
    return %arg0, %c0_i32 : i32, i32
  }
  func.func @transform_1(%arg0: i32) -> (i32, i32) {
    %c0_i32 = arith.constant 0 : i32
    %c0_i32_0 = arith.constant 0 : i32
    %c0_i32_1 = arith.constant 0 : i32
    return %c0_i32, %c0_i32_0 : i32, i32
  }
  func.func @transform_2(%arg0: i32) -> (i32, i32) {
    %c0_i32 = arith.constant 0 : i32
    %c0_i32_0 = arith.constant 0 : i32
    %c0_i32_1 = arith.constant 0 : i32
    return %c0_i32, %c0_i32_0 : i32, i32
  }
  func.func @transform_3(%arg0: i32) -> (i32, i32) {
    %c0_i32 = arith.constant 0 : i32
    %c0_i32_0 = arith.constant 0 : i32
    %c0_i32_1 = arith.constant 0 : i32
    return %c0_i32, %c0_i32_0 : i32, i32
  }
  func.func @transform_4(%arg0: i32) -> (i32, i32) {
    %c0_i32 = arith.constant 0 : i32
    %c0_i32_0 = arith.constant 0 : i32
    %c0_i32_1 = arith.constant 0 : i32
    return %c0_i32, %c0_i32_0 : i32, i32
  }
  func.func @transform_5(%arg0: i32) -> (i32, i32) {
    %c0_i32 = arith.constant 0 : i32
    %c0_i32_0 = arith.constant 0 : i32
    %c0_i32_1 = arith.constant 0 : i32
    return %c0_i32, %c0_i32_0 : i32, i32
  }
  func.func @transform_6(%arg0: i32) -> (i32, i32) {
    %c0_i32 = arith.constant 0 : i32
    %c0_i32_0 = arith.constant 0 : i32
    %c0_i32_1 = arith.constant 0 : i32
    return %c0_i32, %c0_i32_0 : i32, i32
  }
  func.func @transform_7(%arg0: i32) -> (i32, i32) {
    %c0_i32 = arith.constant 0 : i32
    %c0_i32_0 = arith.constant 0 : i32
    %c0_i32_1 = arith.constant 0 : i32
    return %c0_i32, %c0_i32_0 : i32, i32
  }
  func.func @transform_8(%arg0: i32) -> (i32, i32) {
    %c0_i32 = arith.constant 0 : i32
    %c0_i32_0 = arith.constant 0 : i32
    return %arg0, %c0_i32 : i32, i32
  }
  func.func @transform_9(%arg0: i32) -> (i32, i32) {
    %c0_i32 = arith.constant 0 : i32
    %c0_i32_0 = arith.constant 0 : i32
    return %arg0, %c0_i32 : i32, i32
  }
}

</mosaic_0001>

<bundles_post_ra>
// kernel: tpu_custom_call.1
= control target key start
LH: loop header
LB: loop body
LE: loop exit
PB: predicated region body
PF: predicated region fallthrough
CT: control target
= control target key end

     0   :  { %15 = vsyncpa [#allocation3], 0  ;;  %s1680_s0 = inlined_call_operand.hbm [shape: bf16[32,64], index: 0, kind: input, shape index: {}]   ;;  %s1681_s1 = inlined_call_operand.hbm [shape: bf16[64,128], index: 1, kind: input, shape index: {}]   ;;  %s1682_s2 = inlined_call_operand.hbm [shape: bf16[128,128], index: 2, kind: input, shape index: {}]   ;;  %s1683_s3 = inlined_call_operand.hbm [shape: bf16[128,128], index: 3, kind: input, shape index: {}]   ;;  %s1684_s4 = inlined_call_operand.hbm [shape: bf16[128,128], index: 4, kind: input, shape index: {}]   ;;  %s1685_s5 = inlined_call_operand.hbm [shape: bf16[128,128], index: 5, kind: input, shape index: {}]   ;;  %s1686_s6 = inlined_call_operand.hbm [shape: bf16[128,128], index: 6, kind: input, shape index: {}]   ;;  %s1687_s7 = inlined_call_operand.vmem [shape: f32[6,128], index: 7, kind: input, shape index: {}]   ;;  %s1688_s8 = inlined_call_operand.hbm [shape: bf16[32,128], index: 8, kind: output, shape index: {0}]   ;;  %s1689_s9 = inlined_call_operand.hbm [shape: bf16[32,128], index: 9, kind: output, shape index: {1}]  }
   0x1   :  { %16 = vsyncpa [#allocation6], 0 }
   0x2   :  { %17 = vsyncpa [#allocation9], 0 }
   0x3   :  { %18 = vsyncpa [#allocation12], 0 }
   0x4   :  { %19 = vsyncpa [#allocation4], 0 }
   0x5   :  { %20 = vsyncpa [#allocation16], 0  ;;  %s1442_s30 = smov [#allocation5]   ;;  %s1443_s11 = smov [#allocation8]  }
   0x6   :  { %s38_s10 = sshll.u32 %s1442_s30, 4  ;;  %s62_s12 = sshll.u32 %s1443_s11, 4  ;;  %s39_s10 = int_to_ptr.vmem [resolvable:$true] %s38_s10  ;;  %s1503_s12 = int_to_ptr.vmem [resolvable:$true] %s62_s12 }
   0x7   :  { %s1232_s15 = scalar_lea.hbm %s1681_s1, 512 }
   0x8   :  { %p1233_p0 = scmp.ne.s32.totalorder %s1681_s1, %s1232_s15  ;;  %p1236_p1 = scmp.lt.u32.totalorder %s1232_s15, %s1681_s1 }
   0xa   :  { %p1238_p2 = pnand %p1236_p1, %p1233_p0 }
   0xc   :  { %1241 = shalt.err (!%p1238_p2)
}
   0xd   :  { %s1242_s20 = scalar_lea.vmem %s39_s10, 512  ;;  %p1247_p4 = scmp.lt.s32.totalorder %s39_s10, %s39_s10 }
   0xe   :  { %p1243_p3 = scmp.ne.s32.totalorder %s39_s10, %s1242_s20  ;;  %p1248_p5 = scmp.lt.s32.totalorder %s1242_s20, %s1242_s20 }
  0x10   :  { %p1249_p6 = por %p1248_p5, %p1247_p4 }
  0x12   :  { %p1250_p7 = pnand %p1249_p6, %p1243_p3 }
  0x14   :  { %1253 = shalt.err (!%p1250_p7)
}
  0x15   :  { %s1444_s21 = smov 64   ;;  %s1445_s22 = smov 4  }
  0x16   :  { %44 = dma.hbm_to_vmem [thread:$0]  %s1681_s1, 512, %s39_s10, [#allocation6], %s1444_s21, %s1444_s21, %s1445_s22  }
  0x17   :  { %s1254_s27 = scalar_lea.hbm %s1683_s3, 1024 }
  0x18   :  { %p1255_p8 = scmp.ne.s32.totalorder %s1683_s3, %s1254_s27  ;;  %p1258_p9 = scmp.lt.u32.totalorder %s1254_s27, %s1683_s3 }
  0x1a   :  { %p1260_p10 = pnand %p1258_p9, %p1255_p8 }
  0x1c   :  { %1263 = shalt.err (!%p1260_p10)
}
  0x1d   :  { %s1264_s13 = scalar_lea.vmem %s1503_s12, 1024  ;;  %p1269_p12 = scmp.lt.s32.totalorder %s1503_s12, %s1503_s12 }
  0x1e   :  { %p1265_p11 = scmp.ne.s32.totalorder %s1503_s12, %s1264_s13  ;;  %p1270_p13 = scmp.lt.s32.totalorder %s1264_s13, %s1264_s13 }
  0x20   :  { %p1271_p0 = por %p1270_p13, %p1269_p12 }
  0x22   :  { %p1272_p1 = pnand %p1271_p0, %p1265_p11 }
  0x24   :  { %1275 = shalt.err (!%p1272_p1)
}
  0x25   :  { %68 = dma.hbm_to_vmem [thread:$0]  %s1683_s3, 1024, %s1503_s12, [#allocation9], %s1444_s21, %s1444_s21, %s1445_s22  }
  0x26   :  { %s1446_s14 = smov [#allocation11]   ;;  %s1447_s16 = smov [#allocation2]  }
  0x27   :  { %s86_s15 = sshll.u32 %s1446_s14, 4  ;;  %s26_s17 = sshll.u32 %s1447_s16, 4  ;;  %s87_s15 = int_to_ptr.vmem [resolvable:$true] %s86_s15  ;;  %s1540_s17 = int_to_ptr.vmem [resolvable:$true] %s26_s17 }
  0x28   :  { %s1276_s20 = scalar_lea.hbm %s1685_s5, 1024 }
  0x29   :  { %p1277_p2 = scmp.ne.s32.totalorder %s1685_s5, %s1276_s20  ;;  %p1280_p3 = scmp.lt.u32.totalorder %s1276_s20, %s1685_s5 }
  0x2b   :  { %p1282_p4 = pnand %p1280_p3, %p1277_p2 }
  0x2d   :  { %1285 = shalt.err (!%p1282_p4)
}
  0x2e   :  { %s1286_s3 = scalar_lea.vmem %s87_s15, 1024  ;;  %p1291_p6 = scmp.lt.s32.totalorder %s87_s15, %s87_s15 }
  0x2f   :  { %p1287_p5 = scmp.ne.s32.totalorder %s87_s15, %s1286_s3  ;;  %p1292_p7 = scmp.lt.s32.totalorder %s1286_s3, %s1286_s3 }
  0x31   :  { %p1293_p8 = por %p1292_p7, %p1291_p6 }
  0x33   :  { %p1294_p9 = pnand %p1293_p8, %p1287_p5 }
  0x35   :  { %1297 = shalt.err (!%p1294_p9)
}
  0x36   :  { %92 = dma.hbm_to_vmem [thread:$0]  %s1685_s5, 1024, %s87_s15, [#allocation12], %s1444_s21, %s1444_s21, %s1445_s22  }
  0x37   :  { %s1298_s30 = scalar_lea.hbm %s1680_s0, 256 }
  0x38   :  { %p1299_p10 = scmp.ne.s32.totalorder %s1680_s0, %s1298_s30  ;;  %p1302_p11 = scmp.lt.u32.totalorder %s1298_s30, %s1680_s0 }
  0x3a   :  { %p1304_p12 = pnand %p1302_p11, %p1299_p10 }
  0x3c   :  { %1307 = shalt.err (!%p1304_p12)
}
  0x3d   :  { %s1308_s14 = scalar_lea.vmem %s1540_s17, 256  ;;  %p1313_p0 = scmp.lt.s32.totalorder %s1540_s17, %s1540_s17 }
  0x3e   :  { %p1309_p13 = scmp.ne.s32.totalorder %s1540_s17, %s1308_s14  ;;  %p1314_p1 = scmp.lt.s32.totalorder %s1308_s14, %s1308_s14 }
  0x40   :  { %p1315_p2 = por %p1314_p1, %p1313_p0 }
  0x42   :  { %p1316_p3 = pnand %p1315_p2, %p1309_p13 }
  0x44   :  { %1319 = shalt.err (!%p1316_p3)
}
  0x45   :  { %32 = dma.hbm_to_vmem [thread:$0]  %s1680_s0, 256, %s1540_s17, [#allocation3], %s1444_s21, %s1444_s21, %s1445_s22  }
  0x46   :  { %s1448_s16 = smov [#allocation7]   ;;  %s1449_s19 = smov [#allocation10]  }
  0x47   :  { %s50_s18 = sshll.u32 %s1448_s16, 4  ;;  %s74_s20 = sshll.u32 %s1449_s19, 4  ;;  %s51_s18 = int_to_ptr.vmem [resolvable:$true] %s50_s18  ;;  %s1577_s20 = int_to_ptr.vmem [resolvable:$true] %s74_s20 }
  0x48   :  { %s1320_s25 = scalar_lea.hbm %s1682_s2, 1024 }
  0x49   :  { %p1321_p4 = scmp.ne.s32.totalorder %s1682_s2, %s1320_s25  ;;  %p1324_p5 = scmp.lt.u32.totalorder %s1320_s25, %s1682_s2 }
  0x4b   :  { %p1326_p6 = pnand %p1324_p5, %p1321_p4 }
  0x4d   :  { %1329 = shalt.err (!%p1326_p6)
}
  0x4e   :  { %s1330_s0 = scalar_lea.vmem %s51_s18, 1024  ;;  %p1335_p8 = scmp.lt.s32.totalorder %s51_s18, %s51_s18 }
  0x4f   :  { %p1331_p7 = scmp.ne.s32.totalorder %s51_s18, %s1330_s0  ;;  %p1336_p9 = scmp.lt.s32.totalorder %s1330_s0, %s1330_s0 }
  0x51   :  { %p1337_p10 = por %p1336_p9, %p1335_p8 }
  0x53   :  { %p1338_p11 = pnand %p1337_p10, %p1331_p7 }
  0x55   :  { %1341 = shalt.err (!%p1338_p11)
}
  0x56   :  { %56 = dma.hbm_to_vmem [thread:$0]  %s1682_s2, 1024, %s51_s18, [#allocation6], %s1444_s21, %s1444_s21, %s1445_s22  }
  0x57   :  { %s1342_s11 = scalar_lea.hbm %s1684_s4, 1024 }
  0x58   :  { %p1343_p12 = scmp.ne.s32.totalorder %s1684_s4, %s1342_s11  ;;  %p1346_p13 = scmp.lt.u32.totalorder %s1342_s11, %s1684_s4 }
  0x5a   :  { %p1348_p0 = pnand %p1346_p13, %p1343_p12 }
  0x5c   :  { %1351 = shalt.err (!%p1348_p0)
}
  0x5d   :  { %s1352_s5 = scalar_lea.vmem %s1577_s20, 1024  ;;  %p1357_p2 = scmp.lt.s32.totalorder %s1577_s20, %s1577_s20 }
  0x5e   :  { %p1353_p1 = scmp.ne.s32.totalorder %s1577_s20, %s1352_s5  ;;  %p1358_p3 = scmp.lt.s32.totalorder %s1352_s5, %s1352_s5 }
  0x60   :  { %p1359_p4 = por %p1358_p3, %p1357_p2 }
  0x62   :  { %p1360_p5 = pnand %p1359_p4, %p1353_p1 }
  0x64   :  { %1363 = shalt.err (!%p1360_p5)
}
  0x65   :  { %80 = dma.hbm_to_vmem [thread:$0]  %s1684_s4, 1024, %s1577_s20, [#allocation9], %s1444_s21, %s1444_s21, %s1445_s22  }
  0x66   :  { %s1450_s16 = smov [#allocation13]   ;;  %s1364_s24 = scalar_lea.hbm %s1686_s6, 1024 }
  0x67   :  { %s98_s18 = sshll.u32 %s1450_s16, 4  ;;  %p1365_p6 = scmp.ne.s32.totalorder %s1686_s6, %s1364_s24  ;;  %s99_s18 = int_to_ptr.vmem [resolvable:$true] %s98_s18 }
  0x68   :  { %p1368_p7 = scmp.lt.u32.totalorder %s1364_s24, %s1686_s6 }
  0x6a   :  { %p1370_p8 = pnand %p1368_p7, %p1365_p6 }
  0x6c   :  { %1373 = shalt.err (!%p1370_p8)
}
  0x6d   :  { %s1374_s27 = scalar_lea.vmem %s99_s18, 1024  ;;  %p1379_p10 = scmp.lt.s32.totalorder %s99_s18, %s99_s18 }
  0x6e   :  { %p1375_p9 = scmp.ne.s32.totalorder %s99_s18, %s1374_s27  ;;  %p1380_p11 = scmp.lt.s32.totalorder %s1374_s27, %s1374_s27 }
  0x70   :  { %p1381_p12 = por %p1380_p11, %p1379_p10 }
  0x72   :  { %p1382_p13 = pnand %p1381_p12, %p1375_p9 }
  0x74   :  { %1385 = shalt.err (!%p1382_p13)
}
  0x75   :  { %104 = dma.hbm_to_vmem [thread:$0]  %s1686_s6, 1024, %s99_s18, [#allocation12], %s1444_s21, %s1444_s21, %s1445_s22  }
  0x76   :  { %1430 = dma.done.wait [#allocation3], 256  }
  0x77   :  { %1431 = vsyncadd [#allocation3], 4294967040 }
  0x78   :  { %1432 = dma.done.wait [#allocation6], 1536  }
  0x79   :  { %1433 = vsyncadd [#allocation6], 4294965760 }
  0x7a   :  { %1434 = dma.done.wait [#allocation9], 2048  }
  0x7b   :  { %1435 = vsyncadd [#allocation9], 4294965248 }
  0x7c   :  { %1436 = dma.done.wait [#allocation12], 2048  }
  0x7d   :  { %1437 = vsyncadd [#allocation12], 4294965248  ;;  %v1186_v0 = vld [vmem:[#allocation5] sm:$0xff]   ;;  %v1187_v1 = vld [vmem:[#allocation5 + $0x8] sm:$0xff]   ;;  %vm180_vm0 = vcmask 523264   ;;  %v142_v20 = vlaneseq }
  0x7e   :  { %1063 = vmatprep.subr.bf16.mxu0 %v1186_v0  ;;  %v1188_v2 = vld [vmem:[#allocation5 + $0x10] sm:$0xff]   ;;  %v1192_v4 = vld [vmem:[#allocation7] sm:$0xff]   ;;  %v1193_v5 = vld [vmem:[#allocation7 + $0x8] sm:$0xff]  }
  0x7f   :  { %1064 = vmatpush3.bf16.msra.mxu0 %v1186_v0  ;;  %v1190_v3 = vld [vmem:[#allocation2] sm:$0xff]   ;;  %v1189_v6 = vld [vmem:[#allocation5 + $0x18] sm:$0xff]   ;;  %1075 = vmatprep.subr.bf16.mxu1 %v1192_v4  ;;  %v1196_v10 = vld [vmem:[#allocation7 + $0x20] sm:$0xff]   ;;  %v1631_v21 = vshrl.u32 %v142_v20, 7 }
  0x80   :  { %1065 = vmatprep.subr.bf16.mxu0 %v1187_v1  ;;  %1071 = vmatprep.mubr.msk.bf16.mxu0 %vm180_vm0, %v1190_v3  ;;  %v1194_v7 = vld [vmem:[#allocation7 + $0x10] sm:$0xff]   ;;  %v1191_v8 = vld [vmem:[#allocation2 + $0x8] sm:$0xff]   ;;  %v1197_v11 = vld [vmem:[#allocation7 + $0x28] sm:$0xff]  }
  0x81   :  { %1076 = vmatpush3.bf16.msra.mxu1 %v1192_v4  ;;  %v1195_v9 = vld [vmem:[#allocation7 + $0x18] sm:$0xff]   ;;  %v1198_v12 = vld [vmem:[#allocation7 + $0x30] sm:$0xff]   ;;  %v1200_v14 = vld [vmem:[#allocation8] sm:$0xff]   ;;  %v144_v22 = vsub.s32 0, %v1631_v21  ;;  %v260_v47 = vsub.s32 1, %v1631_v21 }
  0x82   :  { %1077 = vmatprep.subr.bf16.mxu1 %v1193_v5  ;;  %v1199_v13 = vld [vmem:[#allocation7 + $0x38] sm:$0xff]   ;;  %v1201_v15 = vld [vmem:[#allocation8 + $0x8] sm:$0xff]   ;;  %v1202_v16 = vld [vmem:[#allocation8 + $0x10] sm:$0xff]  }
  0x83   :  { %1066 = vmatpush3.bf16.msra.mxu0 %v1187_v1  ;;  %v1203_v17 = vld [vmem:[#allocation8 + $0x18] sm:$0xff]   ;;  %v1204_v18 = vld [vmem:[#allocation8 + $0x20] sm:$0xff]   ;;  %v1205_v19 = vld [vmem:[#allocation8 + $0x28] sm:$0xff]  }
  0x84   :  { %1067 = vmatprep.subr.bf16.mxu0 %v1188_v2  ;;  %v1637_v23 = vld [vmem:[%s1687_s7] sm:$0x3f]  ;;  %v1207_v40 = vld [vmem:[#allocation8 + $0x38] sm:$0xff]   ;;  %v1208_v41 = vld [vmem:[#allocation10] sm:$0xff]   ;;  %s1451_s7 = smov [#allocation14]  }
  0x85   :  { %1078 = vmatpush3.bf16.msra.mxu1 %v1193_v5  ;;  %v145_v24 = vrot.slane %v1637_v23, %v144_v22  ;;  %v1206_v39 = vld [vmem:[#allocation8 + $0x30] sm:$0xff]   ;;  %v1209_v42 = vld [vmem:[#allocation10 + $0x8] sm:$0xff]   ;;  %v1211_v44 = vld [vmem:[#allocation10 + $0x18] sm:$0xff]   ;;  %v261_v48 = vrot.slane %v1637_v23, %v260_v47  ;;  %v643_v47 = vsub.s32 4, %v1631_v21  ;;  %s890_s17 = sshll.u32 %s1451_s7, 4  ;;  %s891_s17 = int_to_ptr.vmem [resolvable:$true] %s890_s17 }
  0x86   :  { %1079 = vmatprep.subr.bf16.mxu1 %v1194_v7  ;;  %v1210_v43 = vld [vmem:[#allocation10 + $0x10] sm:$0xff]   ;;  %v1212_v45 = vld [vmem:[#allocation10 + $0x20] sm:$0xff]   ;;  %v1213_v46 = vld [vmem:[#allocation10 + $0x28] sm:$0xff]   ;;  %s1386_s28 = scalar_lea.vmem %s891_s17, 256  ;;  %p1391_p1 = scmp.lt.s32.totalorder %s891_s17, %s891_s17 }
  0x87   :  { %1068 = vmatpush3.bf16.msra.mxu0 %v1188_v2  ;;  %v1214_v63 = vld [vmem:[#allocation10 + $0x30] sm:$0xff]   ;;  %v1215_v0 = vld [vmem:[#allocation10 + $0x38] sm:$0xff]   ;;  %v1216_v1 = vld [vmem:[#allocation11] sm:$0xff]   ;;  %p1387_p0 = scmp.ne.s32.totalorder %s891_s17, %s1386_s28  ;;  %p1392_p2 = scmp.lt.s32.totalorder %s1386_s28, %s1386_s28 }
  0x88   :  { %1069 = vmatprep.subr.bf16.mxu0 %v1189_v6  ;;  %v1217_v2 = vld [vmem:[#allocation11 + $0x8] sm:$0xff]   ;;  %v1218_v3 = vld [vmem:[#allocation11 + $0x10] sm:$0xff]   ;;  %v1219_v4 = vld [vmem:[#allocation11 + $0x18] sm:$0xff]  }
  0x89   :  { %1080 = vmatpush3.bf16.msra.mxu1 %v1194_v7  ;;  %v1220_v5 = vld [vmem:[#allocation11 + $0x20] sm:$0xff]   ;;  %v383_v7 = vsub.s32 2, %v1631_v21  ;;  %v1223_v20 = vld [vmem:[#allocation11 + $0x38] sm:$0xff]   ;;  %p1393_p3 = por %p1392_p2, %p1391_p1 }
  0x8a   :  { %1081 = vmatprep.subr.bf16.mxu1 %v1195_v9  ;;  %v1224_v22 = vld [vmem:[#allocation13] sm:$0xff]  }
  0x8b   :  { %1070 = vmatpush3.bf16.msra.mxu0 %v1189_v6  ;;  %v1221_v6 = vld [vmem:[#allocation11 + $0x28] sm:$0xff]   ;;  %p1394_p4 = pnand %p1393_p3, %p1387_p0 }
  0x8c   :  { %1095 = vmatprep.subr.bf16.mxu0 %v1200_v14 }
  0x8d   :  { %1082 = vmatpush3.bf16.msra.mxu1 %v1195_v9 }
  0x8e   :  { %1072 = vmatmul.mubr.msk.bf16.vlgmr.msra.gmra.mrb[0].mxu0 %vm180_vm0, %v1191_v8  ;;  %1083 = vmatprep.subr.bf16.mxu1 %v1196_v10  ;;  %v384_v8 = vrot.slane %v1637_v23, %v383_v7 }
  0x8f   :  { %1096 = vmatpush3.bf16.msra.mxu0 %v1200_v14 }
  0x90   :  { %1097 = vmatprep.subr.bf16.mxu0 %v1201_v15 }
  0x91   :  { %1084 = vmatpush3.bf16.msra.mxu1 %v1196_v10 }
  0x92   :  { %1085 = vmatprep.subr.bf16.mxu1 %v1197_v11 }
  0x93   :  { %1098 = vmatpush3.bf16.msra.mxu0 %v1201_v15 }
  0x94   :  { %1099 = vmatprep.subr.bf16.mxu0 %v1202_v16 }
  0x95   :  { %1086 = vmatpush3.bf16.msra.mxu1 %v1197_v11 }
  0x96   :  { %1087 = vmatprep.subr.bf16.mxu1 %v1198_v12 }
  0x97   :  { %1100 = vmatpush3.bf16.msra.mxu0 %v1202_v16 }
  0x98   :  { %1101 = vmatprep.subr.bf16.mxu0 %v1203_v17 }
  0x99   :  { %1088 = vmatpush3.bf16.msra.mxu1 %v1198_v12 }
  0x9a   :  { %1089 = vmatprep.subr.bf16.mxu1 %v1199_v13 }
  0x9b   :  { %1102 = vmatpush3.bf16.msra.mxu0 %v1203_v17 }
  0x9c   :  { %1103 = vmatprep.subr.bf16.mxu0 %v1204_v18 }
  0x9d   :  { %1090 = vmatpush3.bf16.msra.mxu1 %v1199_v13 }
  0x9e   :  { %1115 = vmatprep.subr.bf16.mxu1 %v1208_v41 }
  0x9f   :  { %1104 = vmatpush3.bf16.msra.mxu0 %v1204_v18 }
  0xa0   :  { %1105 = vmatprep.subr.bf16.mxu0 %v1205_v19 }
  0xa3   :  { %1106 = vmatpush3.bf16.msra.mxu0 %v1205_v19  ;;  %v1222_v19 = vld [vmem:[#allocation11 + $0x30] sm:$0xff]  }
  0xa4   :  { %1107 = vmatprep.subr.bf16.mxu0 %v1206_v39 }
  0xa7   :  { %1108 = vmatpush3.bf16.msra.mxu0 %v1206_v39 }
  0xa8   :  { %1109 = vmatprep.subr.bf16.mxu0 %v1207_v40 }
  0xab   :  { %1110 = vmatpush3.bf16.msra.mxu0 %v1207_v40 }
  0xac   :  { %1135 = vmatprep.subr.bf16.mxu0 %v1216_v1 }
 0x161   :  { %v1073_v25 = vpop.f32.mrb[0].mxu0 }
 0x162   :  { %v230_v26 = vadd.f32 %v1073_v25, %v145_v24  ;;  %v221_v27 = vpop.f32.mrb[1].mxu0  ;;  %v1226_v25 = vld [vmem:[#allocation13 + $0x10] sm:$0xff]  }
 0x163   :  { %v222_v28 = vadd.f32 %v221_v27, %v145_v24  ;;  %v1074_v29 = vpop.f32.mrb[2].mxu0  ;;  %v1228_v27 = vld [vmem:[#allocation13 + $0x20] sm:$0xff]  }
 0x164   :  { %v233_v30 = vadd.f32 %v1074_v29, %v145_v24  ;;  %v224_v31 = vpop.f32.mrb[3].mxu0  ;;  %v238_v33 = vmax.f32 %v230_v26, 0.0  ;;  %v1227_v26 = vld [vmem:[#allocation13 + $0x18] sm:$0xff]   ;;  %v520_v29 = vsub.s32 3, %v1631_v21 }
 0x165   :  { %v225_v32 = vadd.f32 %v224_v31, %v145_v24  ;;  %v236_v35 = vmax.f32 %v222_v28, 0.0  ;;  %v1225_v24 = vld [vmem:[#allocation13 + $0x8] sm:$0xff]  }
 0x166   :  { %v239_v34 = vmax.f32 %v233_v30, 0.0  ;;  %v1229_v28 = vld [vmem:[#allocation13 + $0x28] sm:$0xff]   ;;  %v521_v30 = vrot.slane %v1637_v23, %v520_v29 }
 0x167   :  { %v237_v36 = vmax.f32 %v225_v32, 0.0 }
 0x168   :  { %v241_v37 = vpack.c.bf16 %v239_v34, %v238_v33 }
 0x169   :  { %v240_v38 = vpack.c.bf16 %v237_v36, %v236_v35 }
 0x16b   :  { %1091 = vmatprep.mubr.bf16.mxu1 %v240_v38 }
 0x16c   :  { %1092 = vmatmul.mubr.bf16.vlgmr.msra.gmra.mrb[0].mxu1 %v241_v37 }
 0x16d   :  { %1116 = vmatpush3.bf16.msra.mxu1 %v1208_v41 }
 0x16e   :  { %1117 = vmatprep.subr.bf16.mxu1 %v1209_v42 }
 0x171   :  { %1118 = vmatpush3.bf16.msra.mxu1 %v1209_v42 }
 0x172   :  { %1119 = vmatprep.subr.bf16.mxu1 %v1210_v43 }
 0x175   :  { %1120 = vmatpush3.bf16.msra.mxu1 %v1210_v43 }
 0x176   :  { %1121 = vmatprep.subr.bf16.mxu1 %v1211_v44 }
 0x179   :  { %1122 = vmatpush3.bf16.msra.mxu1 %v1211_v44 }
 0x17a   :  { %1123 = vmatprep.subr.bf16.mxu1 %v1212_v45 }
 0x17d   :  { %1124 = vmatpush3.bf16.msra.mxu1 %v1212_v45  ;;  %v1230_v45 = vld [vmem:[#allocation13 + $0x30] sm:$0xff]  }
 0x17e   :  { %1125 = vmatprep.subr.bf16.mxu1 %v1213_v46 }
 0x181   :  { %1126 = vmatpush3.bf16.msra.mxu1 %v1213_v46  ;;  %v1231_v46 = vld [vmem:[#allocation13 + $0x38] sm:$0xff]  }
 0x182   :  { %1127 = vmatprep.subr.bf16.mxu1 %v1214_v63 }
 0x185   :  { %1128 = vmatpush3.bf16.msra.mxu1 %v1214_v63 }
 0x186   :  { %1129 = vmatprep.subr.bf16.mxu1 %v1215_v0 }
 0x189   :  { %1130 = vmatpush3.bf16.msra.mxu1 %v1215_v0 }
 0x18a   :  { %1155 = vmatprep.subr.bf16.mxu1 %v1224_v22 }
 0x23f   :  { %v1093_v49 = vpop.f32.mrb[0].mxu1 }
 0x240   :  { %v353_v50 = vadd.f32 %v1093_v49, %v261_v48  ;;  %v344_v51 = vpop.f32.mrb[1].mxu1 }
 0x241   :  { %v345_v52 = vadd.f32 %v344_v51, %v261_v48  ;;  %v1094_v53 = vpop.f32.mrb[2].mxu1 }
 0x242   :  { %v356_v54 = vadd.f32 %v1094_v53, %v261_v48  ;;  %v347_v55 = vpop.f32.mrb[3].mxu1  ;;  %v361_v57 = vmax.f32 %v353_v50, 0.0 }
 0x243   :  { %v348_v56 = vadd.f32 %v347_v55, %v261_v48  ;;  %v359_v59 = vmax.f32 %v345_v52, 0.0  ;;  %v644_v48 = vrot.slane %v1637_v23, %v643_v47 }
 0x244   :  { %v362_v58 = vmax.f32 %v356_v54, 0.0 }
 0x245   :  { %v360_v60 = vmax.f32 %v348_v56, 0.0 }
 0x246   :  { %v364_v61 = vpack.c.bf16 %v362_v58, %v361_v57 }
 0x247   :  { %v363_v62 = vpack.c.bf16 %v360_v60, %v359_v59 }
 0x249   :  { %1111 = vmatprep.mubr.bf16.mxu0 %v363_v62 }
 0x24a   :  { %1112 = vmatmul.mubr.bf16.vlgmr.msra.gmra.mrb[4].mxu0 %v364_v61 }
 0x24b   :  { %1136 = vmatpush3.bf16.msra.mxu0 %v1216_v1 }
 0x24c   :  { %1137 = vmatprep.subr.bf16.mxu0 %v1217_v2 }
 0x24f   :  { %1138 = vmatpush3.bf16.msra.mxu0 %v1217_v2 }
 0x250   :  { %1139 = vmatprep.subr.bf16.mxu0 %v1218_v3 }
 0x253   :  { %1140 = vmatpush3.bf16.msra.mxu0 %v1218_v3 }
 0x254   :  { %1141 = vmatprep.subr.bf16.mxu0 %v1219_v4 }
 0x257   :  { %1142 = vmatpush3.bf16.msra.mxu0 %v1219_v4 }
 0x258   :  { %1143 = vmatprep.subr.bf16.mxu0 %v1220_v5 }
 0x25b   :  { %1144 = vmatpush3.bf16.msra.mxu0 %v1220_v5 }
 0x25c   :  { %1145 = vmatprep.subr.bf16.mxu0 %v1221_v6 }
 0x25f   :  { %1146 = vmatpush3.bf16.msra.mxu0 %v1221_v6 }
 0x260   :  { %1147 = vmatprep.subr.bf16.mxu0 %v1222_v19 }
 0x263   :  { %1148 = vmatpush3.bf16.msra.mxu0 %v1222_v19 }
 0x264   :  { %1149 = vmatprep.subr.bf16.mxu0 %v1223_v20 }
 0x267   :  { %1150 = vmatpush3.bf16.msra.mxu0 %v1223_v20 }
 0x31d   :  { %v1113_v9 = vpop.f32.mrb[4].mxu0 }
 0x31e   :  { %v467_v10 = vpop.f32.mrb[5].mxu0  ;;  %v476_v12 = vadd.f32 %v1113_v9, %v384_v8 }
 0x31f   :  { %v1114_v11 = vpop.f32.mrb[6].mxu0  ;;  %v468_v15 = vadd.f32 %v467_v10, %v384_v8 }
 0x320   :  { %v479_v13 = vadd.f32 %v1114_v11, %v384_v8  ;;  %v470_v14 = vpop.f32.mrb[7].mxu0 }
 0x321   :  { %v471_v16 = vadd.f32 %v470_v14, %v384_v8 }
 0x322   :  { %v483_v17 = vpack.c.bf16 %v479_v13, %v476_v12 }
 0x323   :  { %v482_v18 = vpack.c.bf16 %v471_v16, %v468_v15 }
 0x324   :  { %1005 = vst [vmem:[#allocation14 + $0x8] sm:$0xff] %v483_v17  }
 0x325   :  { %989 = vst [vmem:[#allocation14] sm:$0xff] %v482_v18   ;;  %1131 = vmatprep.mubr.bf16.mxu1 %v482_v18 }
 0x326   :  { %1132 = vmatmul.mubr.bf16.vlgmr.msra.gmra.mrb[4].mxu1 %v483_v17 }
 0x327   :  { %1156 = vmatpush3.bf16.msra.mxu1 %v1224_v22 }
 0x328   :  { %1157 = vmatprep.subr.bf16.mxu1 %v1225_v24 }
 0x32b   :  { %1158 = vmatpush3.bf16.msra.mxu1 %v1225_v24 }
 0x32c   :  { %1159 = vmatprep.subr.bf16.mxu1 %v1226_v25 }
 0x32f   :  { %1160 = vmatpush3.bf16.msra.mxu1 %v1226_v25 }
 0x330   :  { %1161 = vmatprep.subr.bf16.mxu1 %v1227_v26 }
 0x333   :  { %1162 = vmatpush3.bf16.msra.mxu1 %v1227_v26 }
 0x334   :  { %1163 = vmatprep.subr.bf16.mxu1 %v1228_v27 }
 0x337   :  { %1164 = vmatpush3.bf16.msra.mxu1 %v1228_v27 }
 0x338   :  { %1165 = vmatprep.subr.bf16.mxu1 %v1229_v28 }
 0x33b   :  { %1166 = vmatpush3.bf16.msra.mxu1 %v1229_v28 }
 0x33c   :  { %1167 = vmatprep.subr.bf16.mxu1 %v1230_v45 }
 0x33f   :  { %1168 = vmatpush3.bf16.msra.mxu1 %v1230_v45 }
 0x340   :  { %1169 = vmatprep.subr.bf16.mxu1 %v1231_v46 }
 0x343   :  { %1170 = vmatpush3.bf16.msra.mxu1 %v1231_v46 }
 0x3f9   :  { %v1133_v31 = vpop.f32.mrb[4].mxu1 }
 0x3fa   :  { %v613_v32 = vadd.f32 %v1133_v31, %v521_v30  ;;  %v604_v33 = vpop.f32.mrb[5].mxu1 }
 0x3fb   :  { %v605_v34 = vadd.f32 %v604_v33, %v521_v30  ;;  %v1134_v35 = vpop.f32.mrb[6].mxu1 }
 0x3fc   :  { %v616_v36 = vadd.f32 %v1134_v35, %v521_v30  ;;  %v607_v37 = vpop.f32.mrb[7].mxu1  ;;  %v621_v39 = vmax.f32 %v613_v32, 0.0 }
 0x3fd   :  { %v608_v38 = vadd.f32 %v607_v37, %v521_v30  ;;  %v619_v41 = vmax.f32 %v605_v34, 0.0 }
 0x3fe   :  { %v622_v40 = vmax.f32 %v616_v36, 0.0 }
 0x3ff   :  { %v620_v42 = vmax.f32 %v608_v38, 0.0 }
 0x400   :  { %v624_v43 = vpack.c.bf16 %v622_v40, %v621_v39 }
 0x401   :  { %v623_v44 = vpack.c.bf16 %v620_v42, %v619_v41 }
 0x403   :  { %1151 = vmatprep.mubr.bf16.mxu0 %v623_v44 }
 0x404   :  { %1152 = vmatmul.mubr.bf16.vlgmr.msra.gmra.mrb[8].mxu0 %v624_v43 }
 0x4d7   :  { %v1153_v49 = vpop.f32.mrb[8].mxu0 }
 0x4d8   :  { %v736_v50 = vadd.f32 %v1153_v49, %v644_v48  ;;  %v727_v51 = vpop.f32.mrb[9].mxu0 }
 0x4d9   :  { %v728_v52 = vadd.f32 %v727_v51, %v644_v48  ;;  %v1154_v53 = vpop.f32.mrb[10].mxu0 }
 0x4da   :  { %v739_v54 = vadd.f32 %v1154_v53, %v644_v48  ;;  %v730_v55 = vpop.f32.mrb[11].mxu0  ;;  %v744_v57 = vmax.f32 %v736_v50, 0.0 }
 0x4db   :  { %v731_v56 = vadd.f32 %v730_v55, %v644_v48  ;;  %v742_v59 = vmax.f32 %v728_v52, 0.0 }
 0x4dc   :  { %v745_v58 = vmax.f32 %v739_v54, 0.0 }
 0x4dd   :  { %v743_v60 = vmax.f32 %v731_v56, 0.0 }
 0x4de   :  { %v747_v61 = vpack.c.bf16 %v745_v58, %v744_v57 }
 0x4df   :  { %v746_v62 = vpack.c.bf16 %v743_v60, %v742_v59 }
 0x4e1   :  { %1171 = vmatprep.mubr.bf16.mxu1 %v746_v62 }
 0x4e2   :  { %1172 = vmatmul.mubr.bf16.vlgmr.msra.gmra.mrb[8].mxu1 %v747_v61 }
 0x4e3   :  { %1397 = shalt.err (!%p1394_p4)
}
 0x4e4   :  { %s1398_s11 = scalar_lea.hbm %s1688_s8, 256 }
 0x4e5   :  { %p1399_p5 = scmp.ne.s32.totalorder %s1688_s8, %s1398_s11  ;;  %p1402_p6 = scmp.lt.u32.totalorder %s1398_s11, %s1688_s8 }
 0x4e7   :  { %p1404_p7 = pnand %p1402_p6, %p1399_p5 }
 0x4e9   :  { %1407 = shalt.err (!%p1404_p7)
}
 0x4ea   :  { %896 = dma.vmem_to_hbm [thread:$0]  %s891_s17, 256, %s1688_s8, [#allocation4], %s1444_s21, %s1444_s21, %s1445_s22   ;;  %v766_v63 = vsub.s32 5, %v1631_v21 }
 0x4eb   :  { %s1452_s15 = smov [#allocation15]  }
 0x4ec   :  { %v767_v0 = vrot.slane %v1637_v23, %v766_v63  ;;  %s902_s16 = sshll.u32 %s1452_s15, 4  ;;  %s903_s16 = int_to_ptr.vmem [resolvable:$true] %s902_s16 }
 0x4ed   :  { %s1408_s8 = scalar_lea.vmem %s903_s16, 256  ;;  %p1413_p9 = scmp.lt.s32.totalorder %s903_s16, %s903_s16 }
 0x4ee   :  { %p1409_p8 = scmp.ne.s32.totalorder %s903_s16, %s1408_s8  ;;  %p1414_p10 = scmp.lt.s32.totalorder %s1408_s8, %s1408_s8 }
 0x4f0   :  { %p1415_p11 = por %p1414_p10, %p1413_p9 }
 0x4f2   :  { %p1416_p12 = pnand %p1415_p11, %p1409_p8 }
 0x5b5   :  { %v1173_v1 = vpop.f32.mrb[8].mxu1 }
 0x5b6   :  { %v850_v2 = vpop.f32.mrb[9].mxu1  ;;  %v859_v4 = vadd.f32 %v1173_v1, %v767_v0 }
 0x5b7   :  { %v1174_v3 = vpop.f32.mrb[10].mxu1  ;;  %v851_v7 = vadd.f32 %v850_v2, %v767_v0 }
 0x5b8   :  { %v862_v5 = vadd.f32 %v1174_v3, %v767_v0  ;;  %v853_v6 = vpop.f32.mrb[11].mxu1 }
 0x5b9   :  { %v854_v8 = vadd.f32 %v853_v6, %v767_v0 }
 0x5ba   :  { %v1003_v9 = vpack.c.bf16 %v862_v5, %v859_v4 }
 0x5bb   :  { %v998_v10 = vpack.c.bf16 %v854_v8, %v851_v7 }
 0x5bc   :  { %1006 = vst [vmem:[#allocation15 + $0x8] sm:$0xff] %v1003_v9  }
 0x5bd   :  { %999 = vst [vmem:[#allocation15] sm:$0xff] %v998_v10  }
 0x5be   :  { %1419 = shalt.err (!%p1416_p12)
}
 0x5bf   :  { %s1420_s23 = scalar_lea.hbm %s1689_s9, 256 }
 0x5c0   :  { %p1421_p13 = scmp.ne.s32.totalorder %s1689_s9, %s1420_s23  ;;  %p1424_p0 = scmp.lt.u32.totalorder %s1420_s23, %s1689_s9 }
 0x5c2   :  { %p1426_p1 = pnand %p1424_p0, %p1421_p13 }
 0x5c4   :  { %1429 = shalt.err (!%p1426_p1)
}
 0x5c5   :  { %908 = dma.vmem_to_hbm [thread:$0]  %s903_s16, 256, %s1689_s9, [#allocation16], %s1444_s21, %s1444_s21, %s1445_s22  }
 0x5c6   :  { %1438 = dma.done.wait [#allocation4], 256  }
 0x5c7   :  { %1439 = vsyncadd [#allocation4], 4294967040 }
 0x5c8   :  { %1440 = dma.done.wait [#allocation16], 256  }
 0x5c9   :  { %1441 = vsyncadd [#allocation16], 4294967040 }
 0x5ca   :  { %915 = vsyncpa [#allocation3], 1 }
 0x5cb   :  { %916 = vsyncpa [#allocation6], 1 }
 0x5cc   :  { %917 = vsyncpa [#allocation9], 1 }
 0x5cd   :  { %918 = vsyncpa [#allocation12], 1 }
 0x5ce   :  { %919 = vsyncpa [#allocation4], 1 }
 0x5cf   :  { %920 = vsyncpa [#allocation16], 1 }

</bundles_post_ra>
